<compile_context>
chip_gen: v6e
topology: v6e:2x2x1
jax: 0.10.0
libtpu: 0.0.40
codegen_flags: <defaults>
</compile_context>

<pallas_src>
import functools

import jax
import jax.numpy as jnp
from jax.experimental import pallas as pl
from jax.experimental.pallas import tpu as pltpu

_LANE = 128  # output-channel dim is padded to a multiple of this (lane-dense vst)


def _round_up(x, m):
    return (x + m - 1) // m * m


def _vmem_capacity_bytes():
    """Physical per-core VMEM (generation aware); conservative default = v7x (64 MiB)."""
    try:
        info = pltpu.get_tpu_info()
        cap = int(getattr(info, "vmem_capacity_bytes", 0) or 0)
        if cap > 0:
            return cap
    except Exception:
        pass
    return 64 * 1024 * 1024


# ---------------------------------------------------------------------------
# Direct (no HBM im2col) kernel, stride == 1.
#
# The whole padded NHWC image is resident in VMEM (its block index is constant
# along the row-band grid axis, so it is DMA'd once per batch element).  For
# each output-row band the KH*KW shifted windows are concatenated in VMEM into
# a (band_rows, KH*KW*Cin) patch, so ONE deep MXU matmul produces the band:
# no per-tap shallow matmuls, no multi-pass f32 accumulator to spill.
# ---------------------------------------------------------------------------
def _direct_conv_bn_relu_kernel(x_ref, w_ref, b_ref, o_ref, *,
                                ksize_h, ksize_w, dilation, band_h, w_out):
    # x_ref: (Hp, Wp, Cin)          whole padded image
    # w_ref: (KH*KW*Cin, Cout_pad)  scale-folded weights (tap-major, cin-minor)
    # b_ref: (1, Cout_pad)          folded BN bias (f32)
    # o_ref: (band_h*w_out, Cout_pad)
    cin = x_ref.shape[-1]
    row0 = pl.multiple_of(pl.program_id(1) * band_h, band_h)
    taps = []
    for ih in range(ksize_h):
        for iw in range(ksize_w):
            taps.append(x_ref[pl.ds(row0 + ih * dilation, band_h),
                              pl.ds(iw * dilation, w_out), :])
    patches = jnp.concatenate(taps, axis=-1)                 # (band_h, w_out, K)
    patches = patches.reshape(band_h * w_out, ksize_h * ksize_w * cin)
    acc = jnp.dot(patches, w_ref[...], preferred_element_type=jnp.float32)
    o_ref[...] = jnp.maximum(acc + b_ref[...], 0.0).astype(o_ref.dtype)


def _gemm_bn_relu_kernel(p_ref, w_ref, b_ref, o_ref):
    # p_ref: (TM, K) im2col patches   w_ref: (K, Cout_pad)   b_ref: (1, Cout_pad)
    acc = jnp.dot(p_ref[...], w_ref[...], preferred_element_type=jnp.float32)
    o_ref[...] = jnp.maximum(acc + b_ref[...], 0.0).astype(o_ref.dtype)


def _im2col_nhwc(x_nhwc, ksize_h, ksize_w, stride, padding, dilation, h_out, w_out):
    n, _, _, c = x_nhwc.shape
    xp = jnp.pad(x_nhwc, ((0, 0), (padding, padding), (padding, padding), (0, 0)))
    taps = []
    for ih in range(ksize_h):
        for iw in range(ksize_w):
            h0 = ih * dilation
            w0 = iw * dilation
            taps.append(xp[:, h0:h0 + (h_out - 1) * stride + 1:stride,
                              w0:w0 + (w_out - 1) * stride + 1:stride, :])
    patches = jnp.stack(taps, axis=-2)  # (N, Hout, Wout, KH*KW, Cin)
    return patches.reshape(n * h_out * w_out, ksize_h * ksize_w * c)


def _choose_band_h(h_out, w_out, row_align, target_rows=128):
    """Smallest divisor of h_out whose band keeps the out-block row dim aligned
    and gives a reasonably deep M for the MXU; falls back to the whole image."""
    for d in range(1, h_out + 1):
        if h_out % d:
            continue
        if d != h_out and (d * w_out) % row_align:
            continue
        if d * w_out >= target_rows or d == h_out:
            return d
    return h_out


def _choose_tile_m(m, row_align, cap=1024):
    """Divisor-based M tile so the ragged tail never forces an HBM re-pad."""
    best = None
    for d in range(1, min(m, cap) + 1):
        if m % d == 0 and (d % row_align == 0 or d == m):
            best = d
    if best is not None:
        return best, m
    if m <= 8 * cap:
        return m, m                       # single grid step, no padding
    return cap, _round_up(m, cap)         # last resort: pad the ragged tail


def basic_conv2d(x_nchw, conv_weight, gamma, beta, running_mean, running_var,
                 *, stride=1, padding=0, dilation=1, eps=1e-5,
                 compute_dtype=jnp.bfloat16):
    """Forward of BasicConv2d.  x_nchw: [N, Cin, H, W] (PyTorch layout)."""
    n, cin, h, w = x_nchw.shape
    cout, cin_w, ksize_h, ksize_w = conv_weight.shape
    assert cin == cin_w
    out_dtype = x_nchw.dtype

    h_out = (h + 2 * padding - dilation * (ksize_h - 1) - 1) // stride + 1
    w_out = (w + 2 * padding - dilation * (ksize_w - 1) - 1) // stride + 1
    assert h_out > 0 and w_out > 0

    # Eval-mode BN folded to per-output-channel scale/bias.  The scale is folded
    # into the weights in f32 (before the compute-dtype cast); bias is applied
    # in the f32 kernel epilogue.
    scale = gamma / jnp.sqrt(running_var + eps)   # (Cout,)
    bias = beta - running_mean * scale            # (Cout,)

    cout_pad = _round_up(cout, _LANE)             # lane-dense output channels
    bias2d = jnp.pad(bias, (0, cout_pad - cout)).reshape(1, cout_pad).astype(jnp.float32)

    # (Cout, Cin, KH, KW) -> (KH, KW, Cin, Cout_pad) -> (KH*KW*Cin, Cout_pad)
    # K ordering (tap-major, cin-minor) matches both the in-VMEM patch build of
    # the direct kernel and _im2col_nhwc.
    w_hwio = jnp.transpose(conv_weight, (2, 3, 1, 0)) * scale[None, None, None, :]
    w_flat = jnp.pad(w_hwio, ((0, 0), (0, 0), (0, 0), (0, cout_pad - cout)))
    k_depth = ksize_h * ksize_w * cin
    w_flat = w_flat.reshape(k_depth, cout_pad).astype(compute_dtype)

    x_nhwc = jnp.transpose(x_nchw, (0, 2, 3, 1)).astype(compute_dtype)

    cbytes = jnp.dtype(compute_dtype).itemsize
    obytes = jnp.dtype(out_dtype).itemsize
    row_align = 8 if obytes >= 4 else 16

    # Generation-aware VMEM budgets (128 MiB on v5e/v6e, 64 MiB per TC on v7x).
    vmem_cap = _vmem_capacity_bytes()
    vmem_limit = min(int(vmem_cap * 0.75), 100 * 1024 * 1024)
    direct_budget = int(vmem_cap * 0.45)
    make_params = functools.partial(pltpu.CompilerParams, vmem_limit_bytes=vmem_limit)

    use_direct = (stride == 1)
    if use_direct:
        hp, wp = h + 2 * padding, w + 2 * padding
        band_h = _choose_band_h(h_out, w_out, row_align)
        band_rows = band_h * w_out
        # Conservative estimate: image/weights/bias/output are double-buffered
        # by the pipeline; the image's Cin lane dim is tile-padded to 128; add
        # the in-kernel patch + f32 matmul result for one band.
        vmem_est = (2 * hp * _round_up(wp, 8) * _round_up(cin, _LANE) * cbytes
                    + 2 * _round_up(k_depth, 8) * cout_pad * cbytes
                    + 2 * 8 * cout_pad * 4
                    + 2 * _round_up(band_rows, 8) * cout_pad * obytes
                    + 2 * _round_up(band_rows, 8) * _round_up(k_depth, _LANE) * cbytes
                    + _round_up(band_rows, 8) * cout_pad * 4)
        use_direct = vmem_est <= direct_budget

    if use_direct:
        xp = jnp.pad(x_nhwc, ((0, 0), (padding, padding), (padding, padding), (0, 0)))
        kernel = functools.partial(
            _direct_conv_bn_relu_kernel,
            ksize_h=ksize_h, ksize_w=ksize_w, dilation=dilation,
            band_h=band_h, w_out=w_out)
        out_flat = pl.pallas_call(
            kernel,
            out_shape=jax.ShapeDtypeStruct((n, h_out * w_out, cout_pad), out_dtype),
            grid_spec=pltpu.PrefetchScalarGridSpec(
                num_scalar_prefetch=0,
                grid=(n, h_out // band_h),
                in_specs=[
                    # Whole padded image; block index constant along the band
                    # axis -> DMA'd once per batch element, reused per band.
                    pl.BlockSpec((None, hp, wp, cin), lambda b, r: (b, 0, 0, 0)),
                    pl.BlockSpec((k_depth, cout_pad), lambda b, r: (0, 0)),
                    pl.BlockSpec((1, cout_pad), lambda b, r: (0, 0)),
                ],
                out_specs=pl.BlockSpec((None, band_rows, cout_pad),
                                       lambda b, r: (b, r, 0)),
            ),
            compiler_params=make_params(
                dimension_semantics=("parallel", "parallel")),
        )(xp, w_flat, bias2d)
        out_nhwc = out_flat[:, :, :cout].reshape(n, h_out, w_out, cout)
    else:
        # Fallback: tiled im2col GEMM (stride > 1 or image too large for VMEM).
        patches = _im2col_nhwc(x_nhwc, ksize_h, ksize_w, stride, padding, dilation,
                               h_out, w_out)
        m, k = patches.shape
        tile_m, m_total = _choose_tile_m(m, row_align)
        if m_total != m:  # only hit when M has no aligned divisor (rare)
            patches = jnp.pad(patches, ((0, m_total - m), (0, 0)))
        out_flat = pl.pallas_call(
            _gemm_bn_relu_kernel,
            out_shape=jax.ShapeDtypeStruct((m_total, cout_pad), out_dtype),
            grid_spec=pltpu.PrefetchScalarGridSpec(
                num_scalar_prefetch=0,
                grid=(m_total // tile_m,),
                in_specs=[
                    pl.BlockSpec((tile_m, k), lambda i: (i, 0)),
                    pl.BlockSpec((k, cout_pad), lambda i: (0, 0)),
                    pl.BlockSpec((1, cout_pad), lambda i: (0, 0)),
                ],
                out_specs=pl.BlockSpec((tile_m, cout_pad), lambda i: (i, 0)),
            ),
            compiler_params=make_params(dimension_semantics=("parallel",)),
        )(patches, w_flat, bias2d)
        out_nhwc = out_flat[:m, :cout].reshape(n, h_out, w_out, cout)

    return jnp.transpose(out_nhwc, (0, 3, 1, 2))  # back to NCHW


def _reference(x_nchw, conv_weight, gamma, beta, running_mean, running_var,
               *, stride, padding, dilation, eps=1e-5):
    y = jax.lax.conv_general_dilated(
        x_nchw, conv_weight,
        window_strides=(stride, stride),
        padding=((padding, padding), (padding, padding)),
        rhs_dilation=(dilation, dilation),
        dimension_numbers=("NCHW", "OIHW", "NCHW"),
    )
    scale = (gamma / jnp.sqrt(running_var + eps)).reshape(1, -1, 1, 1)
    bias = (beta - running_mean * gamma / jnp.sqrt(running_var + eps)).reshape(1, -1, 1, 1)
    return jnp.maximum(y * scale + bias, 0.0)


if __name__ == "__main__":
    # BasicConv2d(in_planes=4, out_planes=8, kernel_size=3, padding=1)
    N, CIN, H, W = 2, 4, 16, 16
    COUT, KH, KW = 8, 3, 3

    key = jax.random.PRNGKey(0)
    kx, kw_, kg, kb, km, kv = jax.random.split(key, 6)
    x = jax.random.normal(kx, (N, CIN, H, W), dtype=jnp.float32)
    conv_weight = jax.random.normal(kw_, (COUT, CIN, KH, KW), dtype=jnp.float32) * 0.1
    gamma = jax.random.uniform(kg, (COUT,), dtype=jnp.float32, minval=0.5, maxval=1.5)
    beta = jax.random.normal(kb, (COUT,), dtype=jnp.float32) * 0.1
    running_mean = jax.random.normal(km, (COUT,), dtype=jnp.float32) * 0.1
    running_var = jax.random.uniform(kv, (COUT,), dtype=jnp.float32, minval=0.5, maxval=1.5)
    params = (conv_weight, gamma, beta, running_mean, running_var)

    # 1) stride=1, padding=1 -> direct (in-VMEM im2col, deep-K matmul) path.
    #    f32 operands first (tight structural check), then the bf16 fast path.
    cfg1 = dict(stride=1, padding=1, dilation=1)
    ref1 = _reference(x, *params, **cfg1)
    out_f32 = jax.block_until_ready(
        basic_conv2d(x, *params, compute_dtype=jnp.float32, **cfg1))
    assert out_f32.shape == (N, COUT, H, W), out_f32.shape
    assert jnp.allclose(out_f32, ref1, atol=1e-3, rtol=1e-3), \
        float(jnp.max(jnp.abs(out_f32 - ref1)))
    out_bf16 = jax.block_until_ready(
        basic_conv2d(x, *params, compute_dtype=jnp.bfloat16, **cfg1))
    assert jnp.allclose(out_bf16, ref1, atol=5e-2, rtol=5e-2), \
        float(jnp.max(jnp.abs(out_bf16 - ref1)))

    # 2) stride=2 -> tiled im2col GEMM fallback path.
    cfg2 = dict(stride=2, padding=1, dilation=1)
    ref2 = _reference(x, *params, **cfg2)
    out2 = jax.block_until_ready(
        basic_conv2d(x, *params, compute_dtype=jnp.bfloat16, **cfg2))
    assert out2.shape == ref2.shape, (out2.shape, ref2.shape)
    assert jnp.allclose(out2, ref2, atol=5e-2, rtol=5e-2), \
        float(jnp.max(jnp.abs(out2 - ref2)))

    print("KERNEL_OK")
</pallas_src>

<mosaic_0001>
module attributes {stable_mosaic.version = 11 : i64} {
  func.func @_direct_conv_bn_relu_kernel(%arg0: i32, %arg1: i32, %arg2: memref<1x18x18x4xf32, #tpu.memory_space<vmem>>, %arg3: memref<36x128xf32, #tpu.memory_space<vmem>>, %arg4: memref<1x128xf32, #tpu.memory_space<vmem>>, %arg5: memref<1x128x128xf32, #tpu.memory_space<vmem>>) attributes {dimension_semantics = [#tpu.dimension_semantics<parallel>, #tpu.dimension_semantics<parallel>], iteration_bounds = array<i64: 2, 2>, scalar_prefetch = 0 : i64, scratch_operands = 0 : i64, tpu.core_type = #tpu.core_type<tc>, window_params = [{transform_indices = @transform_0, window_bounds = array<i64: 1, 18, 18, 4>}, {pipeline_mode = #tpu.pipeline_mode<synchronous>, transform_indices = @transform_1, window_bounds = array<i64: 36, 128>}, {pipeline_mode = #tpu.pipeline_mode<synchronous>, transform_indices = @transform_2, window_bounds = array<i64: 1, 128>}, {transform_indices = @transform_3, window_bounds = array<i64: 1, 128, 128>}]} {
    %c8_i32 = arith.constant 8 : i32
    %0 = arith.muli %arg1, %c8_i32 : i32
    %1 = tpu.assume_multiple %0, 8 : i32
    %c0_i32 = arith.constant 0 : i32
    %2 = arith.addi %1, %c0_i32 : i32
    %c0 = arith.constant 0 : index
    %3 = arith.index_cast %2 : i32 to index
    %c0_0 = arith.constant 0 : index
    %c0_1 = arith.constant 0 : index
    %4 = vector.load %arg2[%c0, %3, %c0_0, %c0_1] : memref<1x18x18x4xf32, #tpu.memory_space<vmem>>, vector<1x8x16x4xf32>
    %5 = vector.shape_cast %4 : vector<1x8x16x4xf32> to vector<8x16x4xf32>
    %c0_i32_2 = arith.constant 0 : i32
    %6 = arith.addi %1, %c0_i32_2 : i32
    %c0_3 = arith.constant 0 : index
    %7 = arith.index_cast %6 : i32 to index
    %c1 = arith.constant 1 : index
    %c0_4 = arith.constant 0 : index
    %8 = vector.load %arg2[%c0_3, %7, %c1, %c0_4] : memref<1x18x18x4xf32, #tpu.memory_space<vmem>>, vector<1x8x16x4xf32>
    %9 = vector.shape_cast %8 : vector<1x8x16x4xf32> to vector<8x16x4xf32>
    %c0_i32_5 = arith.constant 0 : i32
    %10 = arith.addi %1, %c0_i32_5 : i32
    %c0_6 = arith.constant 0 : index
    %11 = arith.index_cast %10 : i32 to index
    %c2 = arith.constant 2 : index
    %c0_7 = arith.constant 0 : index
    %12 = vector.load %arg2[%c0_6, %11, %c2, %c0_7] : memref<1x18x18x4xf32, #tpu.memory_space<vmem>>, vector<1x8x16x4xf32>
    %13 = vector.shape_cast %12 : vector<1x8x16x4xf32> to vector<8x16x4xf32>
    %c1_i32 = arith.constant 1 : i32
    %14 = arith.addi %1, %c1_i32 : i32
    %c0_8 = arith.constant 0 : index
    %15 = arith.index_cast %14 : i32 to index
    %c0_9 = arith.constant 0 : index
    %c0_10 = arith.constant 0 : index
    %16 = vector.load %arg2[%c0_8, %15, %c0_9, %c0_10] : memref<1x18x18x4xf32, #tpu.memory_space<vmem>>, vector<1x8x16x4xf32>
    %17 = vector.shape_cast %16 : vector<1x8x16x4xf32> to vector<8x16x4xf32>
    %c1_i32_11 = arith.constant 1 : i32
    %18 = arith.addi %1, %c1_i32_11 : i32
    %c0_12 = arith.constant 0 : index
    %19 = arith.index_cast %18 : i32 to index
    %c1_13 = arith.constant 1 : index
    %c0_14 = arith.constant 0 : index
    %20 = vector.load %arg2[%c0_12, %19, %c1_13, %c0_14] : memref<1x18x18x4xf32, #tpu.memory_space<vmem>>, vector<1x8x16x4xf32>
    %21 = vector.shape_cast %20 : vector<1x8x16x4xf32> to vector<8x16x4xf32>
    %c1_i32_15 = arith.constant 1 : i32
    %22 = arith.addi %1, %c1_i32_15 : i32
    %c0_16 = arith.constant 0 : index
    %23 = arith.index_cast %22 : i32 to index
    %c2_17 = arith.constant 2 : index
    %c0_18 = arith.constant 0 : index
    %24 = vector.load %arg2[%c0_16, %23, %c2_17, %c0_18] : memref<1x18x18x4xf32, #tpu.memory_space<vmem>>, vector<1x8x16x4xf32>
    %25 = vector.shape_cast %24 : vector<1x8x16x4xf32> to vector<8x16x4xf32>
    %c2_i32 = arith.constant 2 : i32
    %26 = arith.addi %1, %c2_i32 : i32
    %c0_19 = arith.constant 0 : index
    %27 = arith.index_cast %26 : i32 to index
    %c0_20 = arith.constant 0 : index
    %c0_21 = arith.constant 0 : index
    %28 = vector.load %arg2[%c0_19, %27, %c0_20, %c0_21] : memref<1x18x18x4xf32, #tpu.memory_space<vmem>>, vector<1x8x16x4xf32>
    %29 = vector.shape_cast %28 : vector<1x8x16x4xf32> to vector<8x16x4xf32>
    %c2_i32_22 = arith.constant 2 : i32
    %30 = arith.addi %1, %c2_i32_22 : i32
    %c0_23 = arith.constant 0 : index
    %31 = arith.index_cast %30 : i32 to index
    %c1_24 = arith.constant 1 : index
    %c0_25 = arith.constant 0 : index
    %32 = vector.load %arg2[%c0_23, %31, %c1_24, %c0_25] : memref<1x18x18x4xf32, #tpu.memory_space<vmem>>, vector<1x8x16x4xf32>
    %33 = vector.shape_cast %32 : vector<1x8x16x4xf32> to vector<8x16x4xf32>
    %c2_i32_26 = arith.constant 2 : i32
    %34 = arith.addi %1, %c2_i32_26 : i32
    %c0_27 = arith.constant 0 : index
    %35 = arith.index_cast %34 : i32 to index
    %c2_28 = arith.constant 2 : index
    %c0_29 = arith.constant 0 : index
    %36 = vector.load %arg2[%c0_27, %35, %c2_28, %c0_29] : memref<1x18x18x4xf32, #tpu.memory_space<vmem>>, vector<1x8x16x4xf32>
    %37 = vector.shape_cast %36 : vector<1x8x16x4xf32> to vector<8x16x4xf32>
    %38 = tpu.concatenate %5, %9, %13, %17, %21, %25, %29, %33, %37 in 2 : vector<8x16x4xf32>, vector<8x16x4xf32>, vector<8x16x4xf32>, vector<8x16x4xf32>, vector<8x16x4xf32>, vector<8x16x4xf32>, vector<8x16x4xf32>, vector<8x16x4xf32>, vector<8x16x4xf32> -> vector<8x16x36xf32>
    %39 = vector.shape_cast %38 : vector<8x16x36xf32> to vector<128x36xf32>
    %c0_30 = arith.constant 0 : index
    %c0_31 = arith.constant 0 : index
    %40 = vector.load %arg3[%c0_30, %c0_31] : memref<36x128xf32, #tpu.memory_space<vmem>>, vector<36x128xf32>
    %cst = arith.constant dense<0.000000e+00> : vector<128x128xf32>
    %41 = tpu.matmul %39, %40, %cst {dimension_numbers = #tpu.dot_dimension_numbers<[1], [0], [0], [1], [0, 0, 1, 1], [], []>} : vector<128x36xf32>, vector<36x128xf32>, vector<128x128xf32> -> vector<128x128xf32>
    %c0_32 = arith.constant 0 : index
    %c0_33 = arith.constant 0 : index
    %42 = vector.load %arg4[%c0_32, %c0_33] : memref<1x128xf32, #tpu.memory_space<vmem>>, vector<1x128xf32>
    %43 = vector.broadcast %42 : vector<1x128xf32> to vector<128x128xf32>
    %44 = arith.addf %41, %43 : vector<128x128xf32>
    %cst_34 = arith.constant 0.000000e+00 : f32
    %45 = vector.broadcast %cst_34 : f32 to vector<128x128xf32>
    %46 = arith.maximumf %44, %45 : vector<128x128xf32>
    %c0_35 = arith.constant 0 : index
    %c0_36 = arith.constant 0 : index
    %c0_37 = arith.constant 0 : index
    %47 = vector.load %arg5[%c0_35, %c0_36, %c0_37] : memref<1x128x128xf32, #tpu.memory_space<vmem>>, vector<1x128x128xf32>
    %48 = vector.shape_cast %47 : vector<1x128x128xf32> to vector<128x128xf32>
    %49 = vector.shape_cast %46 : vector<128x128xf32> to vector<1x128x128xf32>
    tpu.vector_store %arg5[%c0_35, %c0_36, %c0_37], %49 {strides = array<i32>} : memref<1x128x128xf32, #tpu.memory_space<vmem>>, vector<1x128x128xf32>,
    return
  }
  func.func @transform_0(%arg0: i32, %arg1: i32) -> (i32, i32, i32, i32) {
    %c0_i32 = arith.constant 0 : i32
    %c0_i32_0 = arith.constant 0 : i32
    %c0_i32_1 = arith.constant 0 : i32
    %c0_i32_2 = arith.constant 0 : i32
    return %arg0, %c0_i32, %c0_i32_0, %c0_i32_1 : i32, i32, i32, i32
  }
  func.func @transform_1(%arg0: i32, %arg1: i32) -> (i32, i32) {
    %c0_i32 = arith.constant 0 : i32
    %c0_i32_0 = arith.constant 0 : i32
    %c0_i32_1 = arith.constant 0 : i32
    return %c0_i32, %c0_i32_0 : i32, i32
  }
  func.func @transform_2(%arg0: i32, %arg1: i32) -> (i32, i32) {
    %c0_i32 = arith.constant 0 : i32
    %c0_i32_0 = arith.constant 0 : i32
    %c0_i32_1 = arith.constant 0 : i32
    return %c0_i32, %c0_i32_0 : i32, i32
  }
  func.func @transform_3(%arg0: i32, %arg1: i32) -> (i32, i32, i32) {
    %c0_i32 = arith.constant 0 : i32
    %c0_i32_0 = arith.constant 0 : i32
    return %arg0, %arg1, %c0_i32 : i32, i32, i32
  }
}

</mosaic_0001>

<bundles_post_ra>
// kernel: tpu_custom_call.1
= control target key start
LH: loop header
LB: loop body
LE: loop exit
PB: predicated region body
PF: predicated region fallthrough
CT: control target
= control target key end

     0   :  { %8 = vsyncpa [#allocation3], 0  ;;  %s2488_s0 = inlined_call_operand.vmem [shape: f32[2,18,18,4], index: 0, kind: input, shape index: {}]   ;;  %s2489_s1 = inlined_call_operand.vmem [shape: f32[36,128], index: 1, kind: input, shape index: {}]   ;;  %s2490_s2 = inlined_call_operand.vmem [shape: f32[1,128], index: 2, kind: input, shape index: {}]   ;;  %s2491_s3 = inlined_call_operand.hbm [shape: f32[2,256,128], index: 3, kind: output, shape index: {}]  }
   0x1   :  { %10 = vsyncpa [#allocation3 + $0x1], 0  ;;  %s1732_s12 = smov 0   ;;  %s1734_s13 = smov 0  }
   0x2   :  { %s1736_s14 = smov 0   ;;  %s1738_s15 = smov 0  }
   0x3   :  { %s1740_s16 = smov 0   ;;  %s1742_s17 = smov 0  }
   0x4   :  { %s1744_s18 = smov 0   ;;  %s1746_s19 = smov 0  }
   0x5 LB: > { %s1329_s20 = sadd.s32 4294967295, %s1700_s19   ;;  %s1330_s21 = sadd.s32 4294967294, %s1700_s19   ;;  %s1700_s19 = sphi %s1746_s19, %s16_s19   ;;  %s1696_s18 = sphi %s1744_s18, %s2515_s18   ;;  %s1692_s17 = sphi %s1742_s17, %s2514_s17   ;;  %s1688_s16 = sphi %s1740_s16, %s2513_s16   ;;  %s1684_s15 = sphi %s1738_s15, %s2512_s15   ;;  %s1680_s14 = sphi %s1736_s14, %s2511_s14   ;;  %s1676_s13 = sphi %s1734_s13, %s2510_s13   ;;  %s1672_s12 = sphi %s1732_s12, %s2509_s12  }
   0x6   : > { %s25_s22 = sadd.s32 1, %s1692_s17  ;;  %s28_s23 = sadd.s32 1, %s1696_s18 }
   0x7   : > { %p26_p0 = scmp.ge.s32.totalorder %s25_s22, 2  ;;  %p115_p1 = scmp.ne.s32.totalorder %s1680_s14, %s1676_s13 }
   0x8   : > { %p116_p2 = scmp.eq.s32.totalorder %s1329_s20, 3  ;;  %p121_p5 = scmp.ne.s32.totalorder %s1676_s13, %s1672_s12 }
   0x9   : > { %s2517_s22 = smov (%p26_p0, %s25_s22), 0  ;;  %s2519_s23 = smov (!%p26_p0, %s28_s23), %s1696_s18 }
   0xa   : > { %s101_s24 = ssub.s32 %s1692_s17, %s2517_s22  ;;  %p1783_p3 = por %p116_p2, %p115_p1 }
   0xb   : > { %p30_p4 = scmp.ge.s32.totalorder %s2519_s23, 2  ;;  %p122_p6 = scmp.eq.s32.totalorder %s1330_s21, 3 }
   0xc   : > { %p1333_p7 = scmp.ge.s32.totalorder %s1700_s19, 1  ;;  %p154_p9 = scmp.lt.s32.totalorder %s1700_s19, 5 }
   0xd   : > { %s2521_s23 = smov (%p30_p4, %s2519_s23), 0  ;;  %p1792_p8 = por %p122_p6, %p121_p5 }
   0xe   : > { %s100_s27 = ssub.s32 %s1696_s18, %s2521_s23  ;;  %s105_s28 = sadd.s32 1, %s1680_s14 }
   0xf   : > { %s102_s29 = sor.u32 %s101_s24, %s100_s27  ;;  %p155_p10 = pnand %p1333_p7, %p154_p9 }
  0x10   : > { %p103_p11 = scmp.eq.s32.totalorder %s102_s29, 0 }
  0x11   : > { %158 = sbr.rel (%p155_p10) target bundleno = 612 (0x264), region = 32 }
  0x12   : > { %s1801_s30 = scalar_select %p103_p11, %s1680_s14, %s105_s28  }
  0x16   : > { %p178_p12 = scmp.lt.s32.totalorder %s1688_s16, 1  ;;  %s1337_s5 = smul.u32 192, %s1684_s15  ;;  %v989_v26 = vld [vmem:[%s2489_s1 + $0x20] sm:$0xf]  ;;  %vm1046_vm0 = vcmask 1043456   ;;  %v988_v29 = vld [vmem:[%s2489_s1 + $0x18] sm:$0xff] }
  0x17   : > { %s1702_s11 = smov 4   ;;  %s1703_s20 = smov 8   ;;  %1483 = vmatprep.subr.msk.mxu0 %vm1046_vm0, %v989_v26  ;;  %1517 = vmatprep.subr.msk.mxu1 %vm1046_vm0, %v989_v26  ;;  %v987_v30 = vld [vmem:[%s2489_s1 + $0x10] sm:$0xff]  ;;  %v986_v33 = vld [vmem:[%s2489_s1 + $0x8] sm:$0xff]  ;;  %v985_v34 = vld [vmem:[%s2489_s1] sm:$0xff]  ;;  %vm849_vm1 = vcmask 31744  }
  0x18   : > { %s179_s4 = scalar_select %p178_p12, %s1688_s16, 1  ;;  %1484 = vmatpush3.msk.msra.mxu0 %vm1046_vm0, %v989_v26  ;;  %1522 = vmatpush3.msk.msra.mxu1 %vm1046_vm0, %v989_v26  ;;  %vm866_vm2 = vcmask 64512   ;;  %vm883_vm3 = vcmask 97280   ;;  %vm900_vm4 = vcmask 130048   ;;  %vm917_vm5 = vcmask 162816  }
  0x19   : > { %s1704_s21 = smov 12   ;;  %s1705_s24 = smov 16   ;;  %1485 = vmatprep.subr.mxu0 %v988_v29  ;;  %1518 = vmatprep.subr.mxu1 %v988_v29  ;;  %vm934_vm6 = vcmask 195584   ;;  %vm951_vm7 = vcmask 228352   ;;  %vm968_vm8 = vcmask 261120   ;;  %vm997_vm9 = vcmask 293888  }
  0x1a   : > { %s1527_s6 = smul.u32 432, %s179_s4  ;;  %s1706_s27 = smov 20   ;;  %1486 = vmatpush3.msra.mxu0 %v988_v29  ;;  %1523 = vmatpush3.msra.mxu1 %v988_v29 }
  0x1b   : > { %s1707_s28 = smov 24   ;;  %s1708_s29 = smov 28   ;;  %1487 = vmatprep.subr.mxu0 %v987_v30  ;;  %1519 = vmatprep.subr.mxu1 %v987_v30 }
  0x1c   : > { %s182_s9 = scalar_lea.vmem %s2488_s0, %s1527_s6  ;;  %s1709_s6 = smov 32   ;;  %1488 = vmatpush3.msra.mxu0 %v987_v30  ;;  %1524 = vmatpush3.msra.mxu1 %v987_v30 }
  0x1d   : > { %s1809_s10 = scalar_lea.vmem %s182_s9, %s1337_s5  ;;  %1489 = vmatprep.subr.mxu0 %v986_v33  ;;  %1520 = vmatprep.subr.mxu1 %v986_v33 }
  0x1e   : > { %v204_v0 = vld [vmem:[%s1809_s10 + $0x9] sm:$0xff]  ;;  %v203_v1 = vld [vmem:[%s1809_s10 + $0x1] sm:$0xff]  ;;  %v1840_v8 = vld [vmem:[%s1809_s10 + $0x78] sm:$0xff]  ;;  %1490 = vmatpush3.msra.mxu0 %v986_v33  ;;  %1525 = vmatpush3.msra.mxu1 %v986_v33 }
  0x1f   : > { %355 = vrot.lane.b32.xlu1 %v204_v0, %s1702_s11  ;;  %353 = vrot.lane.b32.xlu0 %v203_v1, %s1702_s11  ;;  %v1816_v2 = vld [vmem:[%s1809_s10 + $0x69] sm:$0xff]  ;;  %v1819_v3 = vld [vmem:[%s1809_s10 + $0x61] sm:$0xff] }
  0x20   : > { %v1826_v4 = vld [vmem:[%s1809_s10 + $0x62] sm:$0xff]  ;;  %v1833_v6 = vld [vmem:[%s1809_s10 + $0x6a] sm:$0xff]  ;;  %v1843_v9 = vld [vmem:[%s1809_s10 + $0x18] sm:$0xff]  ;;  %1491 = vmatprep.subr.mxu0 %v985_v34  ;;  %1521 = vmatprep.subr.mxu1 %v985_v34 }
  0x21   : > { %v219_v5 = vld [vmem:[%s1809_s10 + $0x2] sm:$0xff]  ;;  %v220_v7 = vld [vmem:[%s1809_s10 + $0xa] sm:$0xff]  ;;  %v1860_v12 = vld [vmem:[%s1809_s10 + $0x79] sm:$0xff]  ;;  %1492 = vmatpush3.msra.mxu0 %v985_v34  ;;  %1526 = vmatpush3.msra.mxu1 %v985_v34 }
  0x22   : > { %v1850_v10 = vld [vmem:[%s1809_s10 + $0x80] sm:$0xff]  ;;  %v1897_v20 = vld [vmem:[%s1809_s10 + $0x90] sm:$0xff]  ;;  %v1914_v22 = vld [vmem:[%s1809_s10 + $0x98] sm:$0xff] }
  0x23   : > { %371 = vrot.lane.b32.xlu1 %v1816_v2, %s1702_s11  ;;  %369 = vrot.lane.b32.xlu0 %v1819_v3, %s1702_s11  ;;  %v1853_v11 = vld [vmem:[%s1809_s10 + $0x20] sm:$0xff]  ;;  %v1900_v21 = vld [vmem:[%s1809_s10 + $0x30] sm:$0xff] }
  0x24   : > { %v1356_v13 = vld [vmem:[%s1809_s10 + $0x19] sm:$0xff]  ;;  %v1870_v14 = vld [vmem:[%s1809_s10 + $0x81] sm:$0xff]  ;;  %v1414_v24 = vld [vmem:[%s1809_s10 + $0x91] sm:$0xff] }
  0x25   : > { %v1357_v15 = vld [vmem:[%s1809_s10 + $0x21] sm:$0xff]  ;;  %v1917_v23 = vld [vmem:[%s1809_s10 + $0x38] sm:$0xff]  ;;  %v2001_v45 = vld [vmem:[%s1809_s10 + $0xb0] sm:$0xff] }
  0x26   : > { %v1877_v16 = vld [vmem:[%s1809_s10 + $0x7a] sm:$0xff]  ;;  %v1890_v18 = vld [vmem:[%s1809_s10 + $0x82] sm:$0xff]  ;;  %v1406_v25 = vld [vmem:[%s1809_s10 + $0x31] sm:$0xff]  ;;  %2502 = vst [vmem:[#allocation8_spill] sm:$0xff] %v2001_v45 }
  0x27   : > { %433 = vrot.lane.b32.xlu1 %v1826_v4, %s1703_s20  ;;  %417 = vrot.lane.b32.xlu0 %v219_v5, %s1703_s20  ;;  %v1372_v17 = vld [vmem:[%s1809_s10 + $0x1a] sm:$0xff]  ;;  %2499 = vst [vmem:[#allocation5_spill] sm:$0xff] %v1890_v18  ;;  %v1373_v19 = vld [vmem:[%s1809_s10 + $0x22] sm:$0xff] }
  0x28   : > { %v1415_v27 = vld [vmem:[%s1809_s10 + $0x99] sm:$0xff]  ;;  %v1973_v37 = vld [vmem:[%s1809_s10 + $0xa8] sm:$0xff]  ;;  %v2004_v46 = vld [vmem:[%s1809_s10 + $0x50] sm:$0xff] }
  0x29   : > { %v1407_v28 = vld [vmem:[%s1809_s10 + $0x39] sm:$0xff]  ;;  %2500 = vst [vmem:[#allocation6_spill] sm:$0xff] %v1973_v37  ;;  %v1976_v38 = vld [vmem:[%s1809_s10 + $0x48] sm:$0xff]  ;;  %2503 = vst [vmem:[#allocation9_spill] sm:$0xff] %v2004_v46 }
  0x2a   : > { %v1430_v31 = vld [vmem:[%s1809_s10 + $0x92] sm:$0xff]  ;;  %v1431_v35 = vld [vmem:[%s1809_s10 + $0x9a] sm:$0xff]  ;;  %2501 = vst [vmem:[#allocation7_spill] sm:$0xff] %v1976_v38  ;;  %v1416_v49 = vld [vmem:[%s1809_s10 + $0xa9] sm:$0xff] }
  0x2b   : > { %435 = vrot.lane.b32.xlu1 %v1833_v6, %s1703_s20  ;;  %419 = vrot.lane.b32.xlu0 %v220_v7, %s1703_s20  ;;  %v1422_v32 = vld [vmem:[%s1809_s10 + $0x32] sm:$0xff]  ;;  %v1423_v36 = vld [vmem:[%s1809_s10 + $0x3a] sm:$0xff] }
  0x2c   : > { %v1408_v50 = vld [vmem:[%s1809_s10 + $0x49] sm:$0xff]  ;;  %v1417_v57 = vld [vmem:[%s1809_s10 + $0xb1] sm:$0xff]  ;;  %v1402_v33 = vld [vmem:[%s1809_s10 + $0xc0] sm:$0xff] }
  0x2d   : > { %v1409_v58 = vld [vmem:[%s1809_s10 + $0x51] sm:$0xff] }
  0x2e   : > { %v1432_v61 = vld [vmem:[%s1809_s10 + $0xaa] sm:$0xff] }
  0x2f   : > { %497 = vrot.lane.b32.xlu1 %v1840_v8, %s1704_s21  ;;  %481 = vrot.lane.b32.xlu0 %v1843_v9, %s1704_s21  ;;  %v1424_v62 = vld [vmem:[%s1809_s10 + $0x4a] sm:$0xff] }
  0x33   : > { %499 = vrot.lane.b32.xlu1 %v1850_v10, %s1704_s21  ;;  %483 = vrot.lane.b32.xlu0 %v1853_v11, %s1704_s21 }
  0x37   : > { %561 = vrot.lane.b32.xlu1 %v1860_v12, %s1705_s24  ;;  %545 = vrot.lane.b32.xlu0 %v1356_v13, %s1705_s24 }
  0x3b   : > { %373 = vrot.lane.b32.xlu1 %v1860_v12, %s1702_s11  ;;  %357 = vrot.lane.b32.xlu0 %v1356_v13, %s1702_s11 }
  0x3f   : > { %563 = vrot.lane.b32.xlu1 %v1870_v14, %s1705_s24  ;;  %547 = vrot.lane.b32.xlu0 %v1357_v15, %s1705_s24 }
  0x43   : > { %625 = vrot.lane.b32.xlu1 %v1877_v16, %s1706_s27  ;;  %609 = vrot.lane.b32.xlu0 %v1372_v17, %s1706_s27 }
  0x47   : > { %375 = vrot.lane.b32.xlu1 %v1870_v14, %s1702_s11  ;;  %359 = vrot.lane.b32.xlu0 %v1357_v15, %s1702_s11 }
  0x4b   : > { %437 = vrot.lane.b32.xlu1 %v1877_v16, %s1703_s20  ;;  %421 = vrot.lane.b32.xlu0 %v1372_v17, %s1703_s20 }
  0x4f   : > { %627 = vrot.lane.b32.xlu1 %v1890_v18, %s1706_s27  ;;  %611 = vrot.lane.b32.xlu0 %v1373_v19, %s1706_s27 }
  0x53   : > { %689 = vrot.lane.b32.xlu1 %v1897_v20, %s1707_s28  ;;  %673 = vrot.lane.b32.xlu0 %v1900_v21, %s1707_s28 }
  0x57   : > { %439 = vrot.lane.b32.xlu1 %v1890_v18, %s1703_s20  ;;  %423 = vrot.lane.b32.xlu0 %v1373_v19, %s1703_s20  ;;  %v1433_v19 = vld [vmem:[%s1809_s10 + $0xb2] sm:$0xff] }
  0x5b   : > { %501 = vrot.lane.b32.xlu1 %v1897_v20, %s1704_s21  ;;  %485 = vrot.lane.b32.xlu0 %v1900_v21, %s1704_s21 }
  0x5f   : > { %691 = vrot.lane.b32.xlu1 %v1914_v22, %s1707_s28  ;;  %675 = vrot.lane.b32.xlu0 %v1917_v23, %s1707_s28 }
  0x63   : > { %753 = vrot.lane.b32.xlu1 %v1414_v24, %s1708_s29  ;;  %737 = vrot.lane.b32.xlu0 %v1406_v25, %s1708_s29 }
  0x67   : > { %503 = vrot.lane.b32.xlu1 %v1914_v22, %s1704_s21  ;;  %487 = vrot.lane.b32.xlu0 %v1917_v23, %s1704_s21 }
  0x6b   : > { %565 = vrot.lane.b32.xlu1 %v1414_v24, %s1705_s24  ;;  %549 = vrot.lane.b32.xlu0 %v1406_v25, %s1705_s24 }
  0x6f   : > { %755 = vrot.lane.b32.xlu1 %v1415_v27, %s1708_s29  ;;  %739 = vrot.lane.b32.xlu0 %v1407_v28, %s1708_s29 }
  0x73   : > { %817 = vrot.lane.b32.xlu1 %v1430_v31, %s1709_s6  ;;  %801 = vrot.lane.b32.xlu0 %v1422_v32, %s1709_s6 }
  0x77   : > { %377 = vrot.lane.b32.xlu1 %v1414_v24, %s1702_s11  ;;  %361 = vrot.lane.b32.xlu0 %v1406_v25, %s1702_s11  ;;  %v1425_v24 = vld [vmem:[%s1809_s10 + $0x52] sm:$0xff] }
  0x7b   : > { %567 = vrot.lane.b32.xlu1 %v1415_v27, %s1705_s24  ;;  %551 = vrot.lane.b32.xlu0 %v1407_v28, %s1705_s24 }
  0x7f   : > { %629 = vrot.lane.b32.xlu1 %v1430_v31, %s1706_s27  ;;  %613 = vrot.lane.b32.xlu0 %v1422_v32, %s1706_s27 }
  0x83   : > { %819 = vrot.lane.b32.xlu1 %v1431_v35, %s1709_s6  ;;  %803 = vrot.lane.b32.xlu0 %v1423_v36, %s1709_s6 }
  0x87   : > { %379 = vrot.lane.b32.xlu1 %v1415_v27, %s1702_s11  ;;  %363 = vrot.lane.b32.xlu0 %v1407_v28, %s1702_s11 }
  0x8b   : > { %441 = vrot.lane.b32.xlu1 %v1430_v31, %s1703_s20  ;;  %425 = vrot.lane.b32.xlu0 %v1422_v32, %s1703_s20 }
  0x8f   : > { %631 = vrot.lane.b32.xlu1 %v1431_v35, %s1706_s27  ;;  %615 = vrot.lane.b32.xlu0 %v1423_v36, %s1706_s27 }
  0x91   : > { %v1978_v39 = vpop.permute.xlu1 %355  ;;  %v1980_v40 = vpop.permute.xlu0 %353 }
  0x93   : > { %693 = vrot.lane.b32.xlu1 %v1973_v37, %s1707_s28  ;;  %677 = vrot.lane.b32.xlu0 %v1976_v38, %s1707_s28 }
  0x95   : > { %v1986_v41 = vpop.permute.xlu1 %371  ;;  %v1988_v42 = vpop.permute.xlu0 %369 }
  0x97   : > { %443 = vrot.lane.b32.xlu1 %v1431_v35, %s1703_s20  ;;  %427 = vrot.lane.b32.xlu0 %v1423_v36, %s1703_s20  ;;  %v195_v36 = vld [vmem:[%s1809_s10 + $0x60] sm:$0xff] }
  0x99   : > { %v1992_v43 = vpop.permute.xlu1 %433  ;;  %v1994_v44 = vpop.permute.xlu0 %417 }
  0x9b   : > { %505 = vrot.lane.b32.xlu1 %v1973_v37, %s1704_s21  ;;  %489 = vrot.lane.b32.xlu0 %v1976_v38, %s1704_s21 }
  0x9d   : > { %v2006_v47 = vpop.permute.xlu1 %435  ;;  %v2008_v48 = vpop.permute.xlu0 %419 }
  0x9f   : > { %695 = vrot.lane.b32.xlu1 %v2001_v45, %s1707_s28  ;;  %679 = vrot.lane.b32.xlu0 %v2004_v46, %s1707_s28 }
  0xa1   : > { %v2016_v51 = vpop.permute.xlu1 %497  ;;  %v2018_v52 = vpop.permute.xlu0 %481 }
  0xa3   : > { %757 = vrot.lane.b32.xlu1 %v1416_v49, %s1708_s29  ;;  %741 = vrot.lane.b32.xlu0 %v1408_v50, %s1708_s29 }
  0xa5   : > { %v2022_v53 = vpop.permute.xlu1 %499  ;;  %v2024_v54 = vpop.permute.xlu0 %483 }
  0xa7   : > { %507 = vrot.lane.b32.xlu1 %v2001_v45, %s1704_s21  ;;  %491 = vrot.lane.b32.xlu0 %v2004_v46, %s1704_s21  ;;  %v1403_v45 = vld [vmem:[%s1809_s10 + $0xc8] sm:$0xff] }
  0xa9   : > { %v2030_v55 = vpop.permute.xlu1 %561  ;;  %v2032_v56 = vpop.permute.xlu0 %545 }
  0xab   : > { %569 = vrot.lane.b32.xlu1 %v1416_v49, %s1705_s24  ;;  %553 = vrot.lane.b32.xlu0 %v1408_v50, %s1705_s24 }
  0xad   : > { %v374_v59 = vpop.permute.xlu1 %373  ;;  %v358_v60 = vpop.permute.xlu0 %357 }
  0xaf   : > { %759 = vrot.lane.b32.xlu1 %v1417_v57, %s1708_s29  ;;  %743 = vrot.lane.b32.xlu0 %v1409_v58, %s1708_s29 }
  0xb1   : > { %v2042_v63 = vpop.permute.xlu1 %563  ;;  %v2044_v0 = vpop.permute.xlu0 %547 }
  0xb3   : > { %821 = vrot.lane.b32.xlu1 %v1432_v61, %s1709_s6  ;;  %805 = vrot.lane.b32.xlu0 %v1424_v62, %s1709_s6 }
  0xb5   : > { %v2048_v1 = vpop.permute.xlu1 %625  ;;  %v2050_v5 = vpop.permute.xlu0 %609 }
  0xb7   : > { %381 = vrot.lane.b32.xlu1 %v1416_v49, %s1702_s11  ;;  %365 = vrot.lane.b32.xlu0 %v1408_v50, %s1702_s11 }
  0xb9   : > { %v2054_v7 = vpop.permute.xlu1 %375  ;;  %v2056_v13 = vpop.permute.xlu0 %359 }
  0xbb   : > { %571 = vrot.lane.b32.xlu1 %v1417_v57, %s1705_s24  ;;  %555 = vrot.lane.b32.xlu0 %v1409_v58, %s1705_s24 }
  0xbd   : > { %v438_v15 = vpop.permute.xlu1 %437  ;;  %v422_v17 = vpop.permute.xlu0 %421 }
  0xbf   : > { %633 = vrot.lane.b32.xlu1 %v1432_v61, %s1706_s27  ;;  %617 = vrot.lane.b32.xlu0 %v1424_v62, %s1706_s27 }
  0xc1   : > { %v2064_v25 = vpop.permute.xlu1 %627  ;;  %v2066_v26 = vpop.permute.xlu0 %611 }
  0xc3   : > { %823 = vrot.lane.b32.xlu1 %v1433_v19, %s1709_s6  ;;  %807 = vrot.lane.b32.xlu0 %v1425_v24, %s1709_s6 }
  0xc5   : > { %v2070_v27 = vpop.permute.xlu1 %689  ;;  %v2072_v28 = vpop.permute.xlu0 %673 }
  0xc7   : > { %383 = vrot.lane.b32.xlu1 %v1417_v57, %s1702_s11  ;;  %367 = vrot.lane.b32.xlu0 %v1409_v58, %s1702_s11  ;;  %s1710_s11 = smov [#allocation2]  }
  0xc9   : > { %v2076_v29 = vpop.permute.xlu1 %439  ;;  %v2078_v30 = vpop.permute.xlu0 %423 }
  0xcb   : > { %445 = vrot.lane.b32.xlu1 %v1432_v61, %s1703_s20  ;;  %429 = vrot.lane.b32.xlu0 %v1424_v62, %s1703_s20  ;;  %v860_v61 = vsel %vm849_vm1, %v1840_v8, %v374_v59  ;;  %v852_v62 = vsel %vm849_vm1, %v1843_v9, %v358_v60  ;;  %v196_v9 = vld [vmem:[%s1809_s10 + $0x68] sm:$0xff] }
  0xcc   : > { %v869_v46 = vsel %vm866_vm2, %v852_v62, %v422_v17  ;;  %v858_v17 = vsel %vm849_vm1, %v195_v36, %v1988_v42 }
  0xcd   : > { %v502_v31 = vpop.permute.xlu1 %501  ;;  %v486_v32 = vpop.permute.xlu0 %485 }
  0xce   : > { %v886_v59 = vsel %vm883_vm3, %v869_v46, %v486_v32  ;;  %v875_v46 = vsel %vm866_vm2, %v858_v17, %v1992_v43 }
  0xcf   : > { %635 = vrot.lane.b32.xlu1 %v1433_v19, %s1706_s27  ;;  %619 = vrot.lane.b32.xlu0 %v1425_v24, %s1706_s27 }
  0xd1   : > { %v2085_v34 = vpop.permute.xlu1 %691  ;;  %v2087_v35 = vpop.permute.xlu0 %675 }
  0xd3   : > { %697 = vrot.lane.b32.xlu1 %v1402_v33, %s1707_s28  ;;  %681 = vrot.lane.b32.xlu0 %v195_v36, %s1707_s28 }
  0xd5   : > { %v754_v49 = vpop.permute.xlu1 %753  ;;  %v738_v50 = vpop.permute.xlu0 %737 }
  0xd7   : > { %447 = vrot.lane.b32.xlu1 %v1433_v19, %s1703_s20  ;;  %431 = vrot.lane.b32.xlu0 %v1425_v24, %s1703_s20  ;;  %v187_v19 = vld [vmem:[%s1809_s10] sm:$0xff]  ;;  %v877_v24 = vsel %vm866_vm2, %v860_v61, %v438_v15 }
  0xd8   : > { %v894_v38 = vsel %vm883_vm3, %v877_v24, %v502_v31  ;;  %v850_v15 = vsel %vm849_vm1, %v187_v19, %v1980_v40 }
  0xd9   : > { %v2094_v57 = vpop.permute.xlu1 %503  ;;  %v2096_v58 = vpop.permute.xlu0 %487 }
  0xdb   : > { %509 = vrot.lane.b32.xlu1 %v1402_v33, %s1704_s21  ;;  %493 = vrot.lane.b32.xlu0 %v195_v36, %s1704_s21 }
  0xdd   : > { %v566_v37 = vpop.permute.xlu1 %565  ;;  %v550_v18 = vpop.permute.xlu0 %549 }
  0xde   : > { %v2112_v60 = vsel %vm900_vm4, %v894_v38, %v566_v37  ;;  %v2115_v33 = vsel %vm900_vm4, %v886_v59, %v550_v18  ;;  %v867_v37 = vsel %vm866_vm2, %v850_v15, %v1994_v44  ;;  %v1418_v38 = vld [vmem:[%s1809_s10 + $0xc1] sm:$0xff]  ;;  %v892_v18 = vsel %vm883_vm3, %v875_v46, %v2016_v51  ;;  %v1419_v59 = vld [vmem:[%s1809_s10 + $0xc9] sm:$0xff] }
  0xdf   : > { %699 = vrot.lane.b32.xlu1 %v1403_v45, %s1707_s28  ;;  %683 = vrot.lane.b32.xlu0 %v196_v9, %s1707_s28  ;;  %v884_v40 = vsel %vm883_vm3, %v867_v37, %v2018_v52  ;;  %v909_v32 = vsel %vm900_vm4, %v892_v18, %v2030_v55  ;;  %v1434_v46 = vld [vmem:[%s1809_s10 + $0xc2] sm:$0xff] }
  0xe0   : > { %v901_v43 = vsel %vm900_vm4, %v884_v40, %v2032_v56  ;;  %v926_v44 = vsel %vm917_vm5, %v909_v32, %v2048_v1 }
  0xe1   : > { %v756_v42 = vpop.permute.xlu1 %755  ;;  %v740_v31 = vpop.permute.xlu0 %739  ;;  %v918_v36 = vsel %vm917_vm5, %v901_v43, %v2050_v5  ;;  %v943_v51 = vsel %vm934_vm6, %v926_v44, %v2070_v27 }
  0xe2   : > { %v935_v52 = vsel %vm934_vm6, %v918_v36, %v2072_v28  ;;  %v960_v55 = vsel %vm951_vm7, %v943_v51, %v754_v49  ;;  %v861_v49 = vsel %vm849_vm1, %v1850_v10, %v2054_v7 }
  0xe3   : > { %761 = vrot.lane.b32.xlu1 %v1418_v38, %s1708_s29  ;;  %745 = vrot.lane.b32.xlu0 %v1819_v3, %s1708_s29  ;;  %v952_v56 = vsel %vm951_vm7, %v935_v52, %v738_v50  ;;  %v853_v50 = vsel %vm849_vm1, %v1853_v11, %v2056_v13  ;;  %v878_v19 = vsel %vm866_vm2, %v861_v49, %v2076_v29 }
  0xe4   : > { %v870_v24 = vsel %vm866_vm2, %v853_v50, %v2078_v30  ;;  %v895_v7 = vsel %vm883_vm3, %v878_v19, %v2094_v57  ;;  %v859_v30 = vsel %vm849_vm1, %v196_v9, %v1986_v41  ;;  %v1421_v50 = vld [vmem:[%s1809_s10 + $0xe1] sm:$0xff] }
  0xe5   : > { %v818_v1 = vpop.permute.xlu1 %817  ;;  %v802_v61 = vpop.permute.xlu0 %801  ;;  %v887_v11 = vsel %vm883_vm3, %v870_v24, %v2096_v58  ;;  %v876_v57 = vsel %vm866_vm2, %v859_v30, %v2006_v47 }
  0xe6   : > { %v969_v5 = vsel %vm968_vm8, %v952_v56, %v802_v61  ;;  %v977_v62 = vsel %vm968_vm8, %v960_v55, %v818_v1  ;;  %v893_v37 = vsel %vm883_vm3, %v876_v57, %v2022_v53  ;;  %v1405_v56 = vld [vmem:[%s1809_s10 + $0xe0] sm:$0xff] }
  0xe7   : > { %511 = vrot.lane.b32.xlu1 %v1403_v45, %s1704_s21  ;;  %495 = vrot.lane.b32.xlu0 %v196_v9, %s1704_s21  ;;  %v188_v45 = vld [vmem:[%s1809_s10 + $0x8] sm:$0xff]  ;;  %v910_v9 = vsel %vm900_vm4, %v893_v37, %v2042_v63  ;;  %s1612_s21 = sshll.u32 %s1710_s11, 4  ;;  %s1613_s21 = int_to_ptr.vmem [resolvable:$false] %s1612_s21 }
  0xe8   : > { %1493 = vmatprep.mubr.msk.f32.mxu0 %vm997_vm9, %v969_v5  ;;  %1505 = vmatprep.mubr.msk.f32.mxu1 %vm997_vm9, %v977_v62  ;;  %v851_v29 = vsel %vm849_vm1, %v188_v45, %v1978_v39 }
  0xe9   : > { %v378_v27 = vpop.permute.xlu1 %377  ;;  %v362_v28 = vpop.permute.xlu0 %361  ;;  %v868_v58 = vsel %vm866_vm2, %v851_v29, %v2008_v48  ;;  %v927_v48 = vsel %vm917_vm5, %v910_v9, %v2064_v25  ;;  %v2504_v29 = vld [vmem:[#allocation5_spill] sm:$0xff] }
  0xea   : > { %v885_v39 = vsel %vm883_vm3, %v868_v58, %v2024_v54  ;;  %v944_v53 = vsel %vm934_vm6, %v927_v48, %v2085_v34  ;;  %v854_v43 = vsel %vm849_vm1, %v1900_v21, %v362_v28 }
  0xeb   : > { %573 = vrot.lane.b32.xlu1 %v1418_v38, %s1705_s24  ;;  %557 = vrot.lane.b32.xlu0 %v1819_v3, %s1705_s24  ;;  %v902_v47 = vsel %vm900_vm4, %v885_v39, %v2044_v0  ;;  %v961_v63 = vsel %vm951_vm7, %v944_v53, %v756_v42  ;;  %v1435_v42 = vld [vmem:[%s1809_s10 + $0xca] sm:$0xff] }
  0xec   : > { %v919_v18 = vsel %vm917_vm5, %v902_v47, %v2066_v26 }
  0xed   : > { %v568_v13 = vpop.permute.xlu1 %567  ;;  %v552_v15 = vpop.permute.xlu0 %551  ;;  %v936_v54 = vsel %vm934_vm6, %v919_v18, %v2087_v35 }
  0xee   : > { %v2175_v17 = vsel %vm900_vm4, %v895_v7, %v568_v13  ;;  %v2178_v3 = vsel %vm900_vm4, %v887_v11, %v552_v15  ;;  %v953_v0 = vsel %vm951_vm7, %v936_v54, %v740_v31  ;;  %v862_v31 = vsel %vm849_vm1, %v1897_v20, %v378_v27  ;;  %v1404_v20 = vld [vmem:[%s1809_s10 + $0xd8] sm:$0xff]  ;;  %v1437_v7 = vld [vmem:[%s1809_s10 + $0xe2] sm:$0xff] }
  0xef   : > { %763 = vrot.lane.b32.xlu1 %v1419_v59, %s1708_s29  ;;  %747 = vrot.lane.b32.xlu0 %v1816_v2, %s1708_s29 }
  0xf1   : > { %v2196_v38 = vpop.permute.xlu1 %629  ;;  %v2198_v41 = vpop.permute.xlu0 %613 }
  0xf2   : > { %v928_v37 = vsel %vm917_vm5, %v2112_v60, %v2196_v38  ;;  %v920_v39 = vsel %vm917_vm5, %v2115_v33, %v2198_v41 }
  0xf3   : > { %825 = vrot.lane.b32.xlu1 %v1434_v46, %s1709_s6  ;;  %809 = vrot.lane.b32.xlu0 %v1826_v4, %s1709_s6 }
  0xf5   : > { %v820_v25 = vpop.permute.xlu1 %819  ;;  %v804_v40 = vpop.permute.xlu0 %803 }
  0xf6   : > { %v978_v26 = vsel %vm968_vm8, %v961_v63, %v820_v25  ;;  %v970_v32 = vsel %vm968_vm8, %v953_v0, %v804_v40 }
  0xf7   : > { %575 = vrot.lane.b32.xlu1 %v1419_v59, %s1705_s24  ;;  %559 = vrot.lane.b32.xlu0 %v1816_v2, %s1705_s24 }
  0xf8   : > { %1494 = vmatmul.mubr.msk.f32.vlgmr.msra.gmra.mxu0 %vm997_vm9, %v970_v32  ;;  %1506 = vmatmul.mubr.msk.f32.vlgmr.msra.gmra.mxu1 %vm997_vm9, %v978_v26 }
  0xf9   : > { %v380_v34 = vpop.permute.xlu1 %379  ;;  %v364_v35 = vpop.permute.xlu0 %363 }
  0xfa   : > { %v863_v1 = vsel %vm849_vm1, %v1914_v22, %v380_v34  ;;  %v855_v61 = vsel %vm849_vm1, %v1917_v23, %v364_v35 }
  0xfb   : > { %637 = vrot.lane.b32.xlu1 %v1434_v46, %s1706_s27  ;;  %621 = vrot.lane.b32.xlu0 %v1826_v4, %s1706_s27 }
  0xfd   : > { %v442_v2 = vpop.permute.xlu1 %441  ;;  %v426_v44 = vpop.permute.xlu0 %425 }
  0xfe   : > { %v879_v36 = vsel %vm866_vm2, %v862_v31, %v442_v2  ;;  %v871_v51 = vsel %vm866_vm2, %v854_v43, %v426_v44 }
  0xff   : > { %827 = vrot.lane.b32.xlu1 %v1435_v42, %s1709_s6  ;;  %811 = vrot.lane.b32.xlu0 %v1833_v6, %s1709_s6 }
 0x101   : > { %v2237_v4 = vpop.permute.xlu1 %631  ;;  %v2239_v52 = vpop.permute.xlu0 %615 }
 0x102   : > { %v929_v34 = vsel %vm917_vm5, %v2175_v17, %v2237_v4  ;;  %v921_v35 = vsel %vm917_vm5, %v2178_v3, %v2239_v52  ;;  %v2505_v4 = vld [vmem:[#allocation6_spill] sm:$0xff] }
 0x103   : > { %639 = vrot.lane.b32.xlu1 %v1435_v42, %s1706_s27  ;;  %623 = vrot.lane.b32.xlu0 %v1833_v6, %s1706_s27 }
 0x105   : > { %v694_v21 = vpop.permute.xlu1 %693  ;;  %v678_v55 = vpop.permute.xlu0 %677 }
 0x106   : > { %v945_v9 = vsel %vm934_vm6, %v928_v37, %v694_v21  ;;  %v937_v47 = vsel %vm934_vm6, %v920_v39, %v678_v55  ;;  %v2506_v21 = vld [vmem:[#allocation7_spill] sm:$0xff] }
 0x107   : > { %701 = vrot.lane.b32.xlu1 %v1404_v20, %s1707_s28  ;;  %685 = vrot.lane.b32.xlu0 %v1840_v8, %s1707_s28  ;;  %v1420_v8 = vld [vmem:[%s1809_s10 + $0xd9] sm:$0xff] }
 0x109   : > { %v444_v5 = vpop.permute.xlu1 %443  ;;  %v428_v62 = vpop.permute.xlu0 %427 }
 0x10a   : > { %v880_v6 = vsel %vm866_vm2, %v863_v1, %v444_v5  ;;  %v872_v27 = vsel %vm866_vm2, %v855_v61, %v428_v62 }
 0x10b   : > { %703 = vrot.lane.b32.xlu1 %v1405_v56, %s1707_s28  ;;  %687 = vrot.lane.b32.xlu0 %v1850_v10, %s1707_s28  ;;  %v1436_v10 = vld [vmem:[%s1809_s10 + $0xda] sm:$0xff]  ;;  %s175_s10 = sand.u32 1, %s1676_s13   ;;  %s1457_s28 = sshll.u32 %s1684_s15, 4 }
 0x10c   : > { %s1334_s24 = sshll.u32 %s175_s10, 7  ;;  %s2436_s7 = scalar_lea.sflag [#allocation3], %s175_s10 }
 0x10d   : > { %v506_v28 = vpop.permute.xlu1 %505  ;;  %v490_v49 = vpop.permute.xlu0 %489  ;;  %s2394_s27 = scalar_lea.vmem [#allocation2], %s1334_s24  ;;  %s1614_s24 = scalar_lea.vmem %s1613_s21, 4096 }
 0x10e   : > { %v896_v22 = vsel %vm883_vm3, %v879_v36, %v506_v28  ;;  %v888_v23 = vsel %vm883_vm3, %v871_v51, %v490_v49  ;;  %s1243_s5 = sshll.u32 %s2394_s27, 4  ;;  %s2430_s5 = int_to_ptr.vmem [resolvable:$true] %s1243_s5 }
 0x10f   : > { %765 = vrot.lane.b32.xlu1 %v1420_v8, %s1708_s29  ;;  %749 = vrot.lane.b32.xlu0 %v1860_v12, %s1708_s29  ;;  %s1608_s8 = scalar_lea.vmem %s2430_s5, 2048  ;;  %p1615_p2 = scmp.lt.s32.totalorder %s2430_s5, %s1613_s21 }
 0x110   : > { %p1609_p13 = scmp.ne.s32.totalorder %s2430_s5, %s1608_s8  ;;  %p1616_p4 = scmp.lt.s32.totalorder %s1614_s24, %s1608_s8 }
 0x111   : > { %v696_v45 = vpop.permute.xlu1 %695  ;;  %v680_v19 = vpop.permute.xlu0 %679 }
 0x112   : > { %v946_v42 = vsel %vm934_vm6, %v929_v34, %v696_v45  ;;  %v938_v31 = vsel %vm934_vm6, %v921_v35, %v680_v19  ;;  %p1610_p0 = pnand %p1609_p13, %p1783_p3  ;;  %p1617_p5 = por %p1616_p4, %p1615_p2 }
 0x113   : > { %767 = vrot.lane.b32.xlu1 %v1421_v50, %s1708_s29  ;;  %751 = vrot.lane.b32.xlu0 %v1870_v14, %s1708_s29  ;;  %s1458_s29 = sshll.u32 %s1688_s16, 5 }
 0x114   : > { %s1240_s9 = sadd.s32 %s1458_s29, %s1457_s28  ;;  %p1611_p1 = pneg %p1610_p0 }
 0x115   : > { %v758_v24 = vpop.permute.xlu1 %757  ;;  %v742_v59 = vpop.permute.xlu0 %741  ;;  %s1459_s4 = sshll.u32 %s1240_s9, 7 }
 0x116   : > { %v962_v48 = vsel %vm951_vm7, %v945_v9, %v758_v24  ;;  %v954_v18 = vsel %vm951_vm7, %v937_v47, %v742_v59  ;;  %p1618_p6 = pnand %p1617_p5, %p1611_p1 }
 0x117   : > { %829 = vrot.lane.b32.xlu1 %v1436_v10, %s1709_s6  ;;  %813 = vrot.lane.b32.xlu0 %v1877_v16, %s1709_s6 }
 0x119   : > { %v508_v11 = vpop.permute.xlu1 %507  ;;  %v492_v13 = vpop.permute.xlu0 %491 }
 0x11a   : > { %v897_v12 = vsel %vm883_vm3, %v880_v6, %v508_v11  ;;  %v889_v15 = vsel %vm883_vm3, %v872_v27, %v492_v13 }
 0x11b   : > { %831 = vrot.lane.b32.xlu1 %v1437_v7, %s1709_s6  ;;  %815 = vrot.lane.b32.xlu0 %v2504_v29, %s1709_s6  ;;  %s2426_s6 = scalar_lea.hbm %s2491_s3, %s1459_s4 }
 0x11d   : > { %v570_v14 = vpop.permute.xlu1 %569  ;;  %v554_v30 = vpop.permute.xlu0 %553 }
 0x11e   : > { %v2279_v57 = vsel %vm900_vm4, %v896_v22, %v570_v14  ;;  %v2282_v58 = vsel %vm900_vm4, %v888_v23, %v554_v30 }
 0x121   : > { %v760_v16 = vpop.permute.xlu1 %759  ;;  %v744_v46 = vpop.permute.xlu0 %743 }
 0x122   : > { %v963_v43 = vsel %vm951_vm7, %v946_v42, %v760_v16  ;;  %v955_v2 = vsel %vm951_vm7, %v938_v31, %v744_v46 }
 0x125   : > { %v822_v53 = vpop.permute.xlu1 %821  ;;  %v806_v54 = vpop.permute.xlu0 %805 }
 0x126   : > { %v979_v63 = vsel %vm968_vm8, %v962_v48, %v822_v53  ;;  %v971_v0 = vsel %vm968_vm8, %v954_v18, %v806_v54 }
 0x127   : > { %1496 = vmatprep.mubr.msk.f32.mxu0 %vm997_vm9, %v971_v0  ;;  %1508 = vmatprep.mubr.msk.f32.mxu1 %vm997_vm9, %v979_v63 }
 0x129   : > { %v382_v60 = vpop.permute.xlu1 %381  ;;  %v366_v33 = vpop.permute.xlu0 %365 }
 0x12a   : > { %v864_v52 = vsel %vm849_vm1, %v2505_v4, %v382_v60  ;;  %v856_v55 = vsel %vm849_vm1, %v2506_v21, %v366_v33  ;;  %v2507_v21 = vld [vmem:[#allocation8_spill] sm:$0xff] }
 0x12d   : > { %v572_v38 = vpop.permute.xlu1 %571  ;;  %v556_v41 = vpop.permute.xlu0 %555 }
 0x12e   : > { %v914_v25 = vsel %vm900_vm4, %v897_v12, %v572_v38  ;;  %v906_v40 = vsel %vm900_vm4, %v889_v15, %v556_v41 }
 0x131   : > { %v634_v26 = vpop.permute.xlu1 %633  ;;  %v618_v32 = vpop.permute.xlu0 %617 }
 0x132   : > { %v930_v15 = vsel %vm917_vm5, %v2279_v57, %v634_v26  ;;  %v922_v29 = vsel %vm917_vm5, %v2282_v58, %v618_v32 }
 0x135   : > { %v824_v44 = vpop.permute.xlu1 %823  ;;  %v808_v36 = vpop.permute.xlu0 %807 }
 0x136   : > { %v980_v51 = vsel %vm968_vm8, %v963_v43, %v824_v44  ;;  %v972_v20 = vsel %vm968_vm8, %v955_v2, %v808_v36 }
 0x137   : > { %1497 = vmatmul.mubr.msk.f32.gmra.mxu0 %vm997_vm9, %v972_v20  ;;  %1509 = vmatmul.mubr.msk.f32.gmra.mxu1 %vm997_vm9, %v980_v51 }
 0x139   : > { %v2314_v17 = vpop.permute.xlu1 %383  ;;  %v2316_v3 = vpop.permute.xlu0 %367 }
 0x13d   : > { %v446_v56 = vpop.permute.xlu1 %445  ;;  %v430_v1 = vpop.permute.xlu0 %429 }
 0x13e   : > { %v881_v61 = vsel %vm866_vm2, %v864_v52, %v446_v56  ;;  %v873_v5 = vsel %vm866_vm2, %v856_v55, %v430_v1  ;;  %v865_v55 = vsel %vm849_vm1, %v2507_v21, %v2314_v17  ;;  %v2508_v56 = vld [vmem:[#allocation9_spill] sm:$0xff] }
 0x13f   : > { %v857_v1 = vsel %vm849_vm1, %v2508_v56, %v2316_v3 }
 0x141   : > { %v636_v62 = vpop.permute.xlu1 %635  ;;  %v620_v6 = vpop.permute.xlu0 %619 }
 0x142   : > { %v931_v53 = vsel %vm917_vm5, %v914_v25, %v636_v62  ;;  %v923_v54 = vsel %vm917_vm5, %v906_v40, %v620_v6 }
 0x145   : > { %v698_v27 = vpop.permute.xlu1 %697  ;;  %v682_v8 = vpop.permute.xlu0 %681 }
 0x146   : > { %v947_v14 = vsel %vm934_vm6, %v930_v15, %v698_v27  ;;  %v939_v30 = vsel %vm934_vm6, %v922_v29, %v682_v8 }
 0x149   : > { %v448_v28 = vpop.permute.xlu1 %447  ;;  %v432_v49 = vpop.permute.xlu0 %431 }
 0x14a   : > { %v874_v6 = vsel %vm866_vm2, %v857_v1, %v432_v49 }
 0x14d   : > { %v510_v22 = vpop.permute.xlu1 %509  ;;  %v494_v23 = vpop.permute.xlu0 %493 }
 0x14e   : > { %v898_v44 = vsel %vm883_vm3, %v881_v61, %v510_v22  ;;  %v890_v36 = vsel %vm883_vm3, %v873_v5, %v494_v23  ;;  %v882_v5 = vsel %vm866_vm2, %v865_v55, %v448_v28 }
 0x151   : > { %v700_v50 = vpop.permute.xlu1 %699  ;;  %v684_v45 = vpop.permute.xlu0 %683 }
 0x152   : > { %v948_v63 = vsel %vm934_vm6, %v931_v53, %v700_v50  ;;  %v940_v0 = vsel %vm934_vm6, %v923_v54, %v684_v45 }
 0x155   : > { %v762_v19 = vpop.permute.xlu1 %761  ;;  %v746_v10 = vpop.permute.xlu0 %745 }
 0x156   : > { %v964_v16 = vsel %vm951_vm7, %v947_v14, %v762_v19  ;;  %v956_v46 = vsel %vm951_vm7, %v939_v30, %v746_v10 }
 0x159   : > { %v512_v24 = vpop.permute.xlu1 %511  ;;  %v496_v59 = vpop.permute.xlu0 %495 }
 0x15a   : > { %v899_v22 = vsel %vm883_vm3, %v882_v5, %v512_v24  ;;  %v891_v17 = vsel %vm883_vm3, %v874_v6, %v496_v59 }
 0x15d   : > { %v574_v7 = vpop.permute.xlu1 %573  ;;  %v558_v11 = vpop.permute.xlu0 %557 }
 0x15e   : > { %v915_v4 = vsel %vm900_vm4, %v898_v44, %v574_v7  ;;  %v907_v52 = vsel %vm900_vm4, %v890_v36, %v558_v11 }
 0x161   : > { %v764_v13 = vpop.permute.xlu1 %763  ;;  %v748_v12 = vpop.permute.xlu0 %747 }
 0x162   : > { %v965_v60 = vsel %vm951_vm7, %v948_v63, %v764_v13  ;;  %v957_v33 = vsel %vm951_vm7, %v940_v0, %v748_v12 }
 0x165   : > { %v826_v37 = vpop.permute.xlu1 %825  ;;  %v810_v39 = vpop.permute.xlu0 %809 }
 0x166   : > { %v981_v9 = vsel %vm968_vm8, %v964_v16, %v826_v37  ;;  %v973_v47 = vsel %vm968_vm8, %v956_v46, %v810_v39  ;;  %v2386_v16 = vld [vmem:[%s2490_s2] ss:$0 sm:$0xff] }
 0x167   : > { %1499 = vmatprep.mubr.msk.f32.mxu0 %vm997_vm9, %v973_v47  ;;  %1511 = vmatprep.mubr.msk.f32.mxu1 %vm997_vm9, %v981_v9 }
 0x169   : > { %v576_v57 = vpop.permute.xlu1 %575  ;;  %v560_v58 = vpop.permute.xlu0 %559 }
 0x16a   : > { %v916_v19 = vsel %vm900_vm4, %v899_v22, %v576_v57  ;;  %v908_v28 = vsel %vm900_vm4, %v891_v17, %v560_v58 }
 0x16d   : > { %v638_v48 = vpop.permute.xlu1 %637  ;;  %v622_v18 = vpop.permute.xlu0 %621 }
 0x16e   : > { %v932_v62 = vsel %vm917_vm5, %v915_v4, %v638_v48  ;;  %v924_v61 = vsel %vm917_vm5, %v907_v52, %v622_v18 }
 0x171   : > { %v828_v38 = vpop.permute.xlu1 %827  ;;  %v812_v41 = vpop.permute.xlu0 %811 }
 0x172   : > { %v982_v26 = vsel %vm968_vm8, %v965_v60, %v828_v38  ;;  %v974_v32 = vsel %vm968_vm8, %v957_v33, %v812_v41 }
 0x173   : > { %1500 = vmatmul.mubr.msk.f32.gmra.mxu0 %vm997_vm9, %v974_v32  ;;  %1512 = vmatmul.mubr.msk.f32.gmra.mxu1 %vm997_vm9, %v982_v26 }
 0x175   : > { %v640_v25 = vpop.permute.xlu1 %639  ;;  %v624_v40 = vpop.permute.xlu0 %623 }
 0x176   : > { %v933_v7 = vsel %vm917_vm5, %v916_v19, %v640_v25  ;;  %v925_v24 = vsel %vm917_vm5, %v908_v28, %v624_v40 }
 0x179   : > { %v702_v34 = vpop.permute.xlu1 %701  ;;  %v686_v35 = vpop.permute.xlu0 %685 }
 0x17a   : > { %v949_v27 = vsel %vm934_vm6, %v932_v62, %v702_v34  ;;  %v941_v8 = vsel %vm934_vm6, %v924_v61, %v686_v35 }
 0x17d   : > { %v704_v42 = vpop.permute.xlu1 %703  ;;  %v688_v31 = vpop.permute.xlu0 %687 }
 0x17e   : > { %v950_v59 = vsel %vm934_vm6, %v933_v7, %v704_v42  ;;  %v942_v11 = vsel %vm934_vm6, %v925_v24, %v688_v31 }
 0x181   : > { %v766_v43 = vpop.permute.xlu1 %765  ;;  %v750_v2 = vpop.permute.xlu0 %749 }
 0x182   : > { %v966_v23 = vsel %vm951_vm7, %v949_v27, %v766_v43  ;;  %v958_v3 = vsel %vm951_vm7, %v941_v8, %v750_v2 }
 0x185   : > { %v768_v51 = vpop.permute.xlu1 %767  ;;  %v752_v20 = vpop.permute.xlu0 %751 }
 0x186   : > { %v967_v13 = vsel %vm951_vm7, %v950_v59, %v768_v51  ;;  %v959_v12 = vsel %vm951_vm7, %v942_v11, %v752_v20 }
 0x189   : > { %v830_v50 = vpop.permute.xlu1 %829  ;;  %v814_v45 = vpop.permute.xlu0 %813 }
 0x18a   : > { %v983_v49 = vsel %vm968_vm8, %v966_v23, %v830_v50  ;;  %v975_v10 = vsel %vm968_vm8, %v958_v3, %v814_v45 }
 0x18b   : > { %1502 = vmatprep.mubr.msk.f32.mxu0 %vm997_vm9, %v975_v10  ;;  %1514 = vmatprep.mubr.msk.f32.mxu1 %vm997_vm9, %v983_v49 }
 0x18d   : > { %v832_v15 = vpop.permute.xlu1 %831  ;;  %v816_v29 = vpop.permute.xlu0 %815 }
 0x18e   : > { %v984_v14 = vsel %vm968_vm8, %v967_v13, %v832_v15  ;;  %v976_v30 = vsel %vm968_vm8, %v959_v12, %v816_v29 }
 0x18f   : > { %1503 = vmatmul.mubr.msk.f32.gmra.mxu0 %vm997_vm9, %v976_v30  ;;  %1515 = vmatmul.mubr.msk.f32.gmra.mxu1 %vm997_vm9, %v984_v14 }
 0x1b8   : > { %v1495_v46 = vpop.f32.mrf.mxu0  ;;  %v1507_v37 = vpop.f32.mrf.mxu1 }
 0x1b9   : > { %v1122_v39 = vadd.f32 %v1495_v46, %v2386_v16  ;;  %v1162_v9 = vadd.f32 %v1507_v37, %v2386_v16 }
 0x1ba   : > { %v1116_v47 = vpop.f32.mrf.mxu0  ;;  %v1156_v57 = vpop.f32.mrf.mxu1 }
 0x1bb   : > { %v1196_v58 = vmax.f32 %v1122_v39, 0.0  ;;  %v1204_v48 = vmax.f32 %v1162_v9, 0.0  ;;  %v1117_v18 = vadd.f32 %v2386_v16, %v1116_v47  ;;  %v1157_v53 = vadd.f32 %v2386_v16, %v1156_v57 }
 0x1bd   : > { %1212 = vst [vmem:[%s2394_s27 + $0x8] sm:$0xff] %v1196_v58  ;;  %1220 = vst [vmem:[%s2394_s27 + $0x48] sm:$0xff] %v1204_v48  ;;  %v1195_v54 = vmax.f32 %v1117_v18, 0.0  ;;  %v1203_v63 = vmax.f32 %v1157_v53, 0.0 }
 0x1bf   : > { %1211 = vst [vmem:[%s2394_s27] sm:$0xff] %v1195_v54  ;;  %1219 = vst [vmem:[%s2394_s27 + $0x40] sm:$0xff] %v1203_v63 }
 0x1f7   : > { %v1498_v0 = vpop.f32.mrf.mxu0  ;;  %v1510_v60 = vpop.f32.mrf.mxu1 }
 0x1f8   : > { %v1132_v33 = vadd.f32 %v1498_v0, %v2386_v16  ;;  %v1172_v38 = vadd.f32 %v1510_v60, %v2386_v16 }
 0x1f9   : > { %v1126_v41 = vpop.f32.mrf.mxu0  ;;  %v1166_v26 = vpop.f32.mrf.mxu1 }
 0x1fa   : > { %v1198_v32 = vmax.f32 %v1132_v33, 0.0  ;;  %v1206_v25 = vmax.f32 %v1172_v38, 0.0  ;;  %v1127_v40 = vadd.f32 %v2386_v16, %v1126_v41  ;;  %v1167_v34 = vadd.f32 %v2386_v16, %v1166_v26 }
 0x1fc   : > { %1214 = vst [vmem:[%s2394_s27 + $0x18] sm:$0xff] %v1198_v32  ;;  %1222 = vst [vmem:[%s2394_s27 + $0x58] sm:$0xff] %v1206_v25  ;;  %v1197_v35 = vmax.f32 %v1127_v40, 0.0  ;;  %v1205_v42 = vmax.f32 %v1167_v34, 0.0 }
 0x1fe   : > { %1213 = vst [vmem:[%s2394_s27 + $0x10] sm:$0xff] %v1197_v35  ;;  %1221 = vst [vmem:[%s2394_s27 + $0x50] sm:$0xff] %v1205_v42 }
 0x233   : > { %v1501_v31 = vpop.f32.mrf.mxu0  ;;  %v1513_v43 = vpop.f32.mrf.mxu1 }
 0x234   : > { %v1142_v2 = vadd.f32 %v1501_v31, %v2386_v16  ;;  %v1182_v44 = vadd.f32 %v1513_v43, %v2386_v16 }
 0x235   : > { %v1136_v36 = vpop.f32.mrf.mxu0  ;;  %v1176_v51 = vpop.f32.mrf.mxu1 }
 0x236   : > { %v1200_v20 = vmax.f32 %v1142_v2, 0.0  ;;  %v1208_v4 = vmax.f32 %v1182_v44, 0.0  ;;  %v1137_v52 = vadd.f32 %v2386_v16, %v1136_v36  ;;  %v1177_v21 = vadd.f32 %v2386_v16, %v1176_v51 }
 0x238   : > { %1216 = vst [vmem:[%s2394_s27 + $0x28] sm:$0xff] %v1200_v20  ;;  %1224 = vst [vmem:[%s2394_s27 + $0x68] sm:$0xff] %v1208_v4  ;;  %v1199_v55 = vmax.f32 %v1137_v52, 0.0  ;;  %v1207_v56 = vmax.f32 %v1177_v21, 0.0 }
 0x23a   : > { %1215 = vst [vmem:[%s2394_s27 + $0x20] sm:$0xff] %v1199_v55  ;;  %1223 = vst [vmem:[%s2394_s27 + $0x60] sm:$0xff] %v1207_v56 }
 0x24f   : > { %v1504_v1 = vpop.f32.mrf.mxu0  ;;  %v1516_v62 = vpop.f32.mrf.mxu1 }
 0x250   : > { %v1152_v61 = vadd.f32 %v1504_v1, %v2386_v16  ;;  %v1192_v5 = vadd.f32 %v1516_v62, %v2386_v16 }
 0x251   : > { %v1146_v6 = vpop.f32.mrf.mxu0  ;;  %v1186_v27 = vpop.f32.mrf.mxu1 }
 0x252   : > { %v1202_v8 = vmax.f32 %v1152_v61, 0.0  ;;  %v1210_v22 = vmax.f32 %v1192_v5, 0.0  ;;  %v1147_v17 = vadd.f32 %v2386_v16, %v1146_v6  ;;  %v1187_v23 = vadd.f32 %v2386_v16, %v1186_v27 }
 0x254   : > { %1218 = vst [vmem:[%s2394_s27 + $0x38] sm:$0xff] %v1202_v8  ;;  %1226 = vst [vmem:[%s2394_s27 + $0x78] sm:$0xff] %v1210_v22  ;;  %v1201_v3 = vmax.f32 %v1147_v17, 0.0  ;;  %v1209_v50 = vmax.f32 %v1187_v23, 0.0 }
 0x256   : > { %1217 = vst [vmem:[%s2394_s27 + $0x30] sm:$0xff] %v1201_v3  ;;  %1225 = vst [vmem:[%s2394_s27 + $0x70] sm:$0xff] %v1209_v50 }
 0x257   : > { %1621 = shalt.err (!%p1618_p6)
}
 0x258   : > { %s1622_s10 = scalar_lea.hbm %s2426_s6, 2048  ;;  %s1626_s29 = scalar_lea.hbm %s2491_s3, 8192 }
 0x259   : > { %p1623_p7 = scmp.ne.s32.totalorder %s2426_s6, %s1622_s10  ;;  %p1627_p11 = scmp.lt.s32.totalorder %s2426_s6, %s2491_s3 }
 0x25a   : > { %p1628_p12 = scmp.lt.s32.totalorder %s1626_s29, %s1622_s10 }
 0x25b   : > { %p1624_p9 = pnand %p1623_p7, %p1783_p3 }
 0x25c   : > { %p1629_p13 = por %p1628_p12, %p1627_p11 }
 0x25d   : > { %p1625_p10 = pneg %p1624_p9 }
 0x25f   : > { %p1630_p0 = pnand %p1629_p13, %p1625_p10 }
 0x261   : > { %1633 = shalt.err (!%p1630_p0)
}
 0x262   : > { %s1711_s15 = smov 128  }
 0x263   : > { %1528 = dma.vmem_to_hbm [thread:$0]  (%p1783_p3), %s2430_s5, 2048, %s2426_s6, %s2436_s7, %s1711_s15, %s1711_s15, %s1703_s20  }
 0x264 PF: > { %p1534_p1 = scmp.ge.s32.totalorder %s1700_s19, 2  ;;  %s1258_s16 = sand.u32 1, %s1672_s12  }
 0x265   : > { %s1259_s8 = scalar_lea.sflag [#allocation3], %s1258_s16 }
 0x266   : > { %p1531_p2 = pnand %p1534_p1, %p1792_p8 }
 0x268   : > { %p1532_p4 = pneg %p1531_p2 }
 0x26a   : > { %1667 = dma.done.wait (%p1532_p4), %s1259_s8, 2048  }
 0x26b   : > { %1669 = vsyncadd (%p1532_p4), %s1259_s8, 4294965248  ;;  %s16_s19 = sadd.s32 1, %s1700_s19   ;;  %s2509_s12 = smov %s1676_s13 }
 0x26c   : > { %p13_p5 = scmp.ge.s32.totalorder %s16_s19, 6   ;;  %s2510_s13 = smov %s1680_s14 }
 0x26d   : > { %s2511_s14 = smov %s1801_s30  ;;  %s2512_s15 = smov %s1692_s17 }
 0x26e   : > { %s2513_s16 = smov %s1696_s18  ;;  %s2514_s17 = smov %s2517_s22 }
 0x26f   : > { %s2515_s18 = smov %s2521_s23  ;;  %15 = sbr.rel (!%p13_p5) target bundleno = 5 (0x5), region = 70 }
 0x274   :  { %1264 = vsyncpa [#allocation3], 1 }
 0x275   :  { %1266 = vsyncpa [#allocation3 + $0x1], 1 }

</bundles_post_ra>
